<compile_context>
chip_gen: v7x
topology: tpu7x:2x2x1
jax: 0.10.0
libtpu: 0.0.40
codegen_flags: <defaults>
</compile_context>

<pallas_src>
import jax
import jax.numpy as jnp
from jax.experimental import pallas as pl
from jax.experimental.pallas import tpu as pltpu


def se_kernel(x_ref, w1_ref, b1_ref, w2_ref, b2_ref, o_ref):
    """Fused squeeze-excite on one batch tile. Everything lives in VMEM."""
    x = x_ref[...]                                            # (bt, C, L)
    xf = x if x.dtype == jnp.float32 else x.astype(jnp.float32)

    # Squeeze: global average pool over the length axis (lane reduction).
    s = jnp.mean(xf, axis=-1)                                 # (bt, C)

    # Excite: 1x1 convs on the pooled vector == dense layers (BN folded in W1/b1).
    h = jnp.dot(s, w1_ref[...], preferred_element_type=jnp.float32) + b1_ref[...]
    h = jnp.maximum(h, 0.0)                                   # ReLU
    a = jnp.dot(h, w2_ref[...], preferred_element_type=jnp.float32) + b2_ref[...]
    gate = jax.nn.sigmoid(a)                                  # (bt, C)

    # Scale: broadcast the per-channel gate over the length axis.
    o_ref[...] = (xf * gate[:, :, None]).astype(o_ref.dtype)


def _pick_batch_tile(B, C, L, itemsize, *, budget_bytes=8 << 20, max_tile=256):
    """Largest batch tile dividing B whose x block stays under a VMEM budget."""
    per_row = C * L * itemsize
    cap = max(1, min(max_tile, budget_bytes // max(per_row, 1)))
    bt = min(B, cap)
    while B % bt:
        bt -= 1
    return bt


@jax.jit
def squeeze_excite(x, w1, b1, w2, b2, gamma, beta, running_mean, running_var):
    """x: (B, C, L); w1: (C//2, C, 1); w2: (C, C//2, 1); BN params: (C//2,)."""
    eps = 1e-5
    B, C, L = x.shape
    Ch = w1.shape[0]                                          # int(C / 2)

    # Fold eval-mode BatchNorm1d into the first 1x1 conv (inference semantics).
    # TODO(synk): train-mode BatchNorm1d (batch statistics) is not implemented.
    inv_std = gamma / jnp.sqrt(running_var + eps)                       # (Ch,)
    w1_eff = (w1[:, :, 0] * inv_std[:, None]).T.astype(jnp.float32)     # (C, Ch)
    b1_eff = ((b1 - running_mean) * inv_std + beta).reshape(1, Ch)
    w2_eff = w2[:, :, 0].T.astype(jnp.float32)                          # (Ch, C)
    b2_eff = b2.reshape(1, C)

    bt = _pick_batch_tile(B, C, L, x.dtype.itemsize)
    grid = (B // bt,)
    full = lambda i: (0, 0)            # weights / biases: same block every step

    return pl.pallas_call(
        se_kernel,
        out_shape=jax.ShapeDtypeStruct((B, C, L), x.dtype),
        grid_spec=pltpu.PrefetchScalarGridSpec(
            num_scalar_prefetch=0,
            grid=grid,
            in_specs=[
                pl.BlockSpec((bt, C, L), lambda i: (i, 0, 0)),   # x tile
                pl.BlockSpec((C, Ch), full),                     # W1 (BN folded)
                pl.BlockSpec((1, Ch), full),                     # b1 (BN folded)
                pl.BlockSpec((Ch, C), full),                     # W2
                pl.BlockSpec((1, C), full),                      # b2
            ],
            out_specs=pl.BlockSpec((bt, C, L), lambda i: (i, 0, 0)),
        ),
        compiler_params=pltpu.CompilerParams(
            dimension_semantics=("parallel",)),
    )(x, w1_eff, b1_eff, w2_eff, b2_eff)


def init_params(key, in_channels):
    """Deterministic synthetic params (PyTorch-style uniform fan-in init)."""
    ch = int(in_channels / 2)
    ks = jax.random.split(key, 8)

    def conv1x1(kw, kb, cin, cout):
        bound = 1.0 / jnp.sqrt(cin)          # kernel_size = 1 -> fan_in = cin
        w = jax.random.uniform(kw, (cout, cin, 1), jnp.float32, -bound, bound)
        b = jax.random.uniform(kb, (cout,), jnp.float32, -bound, bound)
        return w, b

    w1, b1 = conv1x1(ks[0], ks[1], in_channels, ch)
    w2, b2 = conv1x1(ks[2], ks[3], ch, in_channels)
    # Non-trivial BatchNorm stats so the BN fold is actually exercised.
    gamma = 1.0 + 0.1 * jax.random.normal(ks[4], (ch,), jnp.float32)
    beta = 0.1 * jax.random.normal(ks[5], (ch,), jnp.float32)
    running_mean = 0.1 * jax.random.normal(ks[6], (ch,), jnp.float32)
    running_var = jnp.abs(1.0 + 0.1 * jax.random.normal(ks[7], (ch,), jnp.float32))
    return w1, b1, w2, b2, gamma, beta, running_mean, running_var


def reference(x, w1, b1, w2, b2, gamma, beta, rmean, rvar, eps=1e-5):
    """Pure-JAX reference of SqueezeExcite.forward (eval-mode BatchNorm)."""
    s = jnp.mean(x, axis=-1)                                   # (B, C)
    h = s @ w1[:, :, 0].T + b1                                 # (B, Ch)
    h = (h - rmean) / jnp.sqrt(rvar + eps) * gamma + beta      # BatchNorm1d (eval)
    h = jnp.maximum(h, 0.0)                                    # ReLU
    a = h @ w2[:, :, 0].T + b2                                 # (B, C)
    gate = jax.nn.sigmoid(a)
    return x * gate[:, :, None]


if __name__ == "__main__":
    key = jax.random.PRNGKey(0)
    kx, kp = jax.random.split(key)

    batch, channels, length = 2, 8, 128
    x = jax.random.normal(kx, (batch, channels, length), jnp.float32)
    params = init_params(kp, channels)

    out = squeeze_excite(x, *params)
    out = jax.block_until_ready(out)

    ref = reference(x, *params)
    assert out.shape == x.shape
    assert jnp.allclose(out, ref, atol=1e-4, rtol=1e-4), "mismatch vs reference"

    print("KERNEL_OK")
</pallas_src>

<mosaic_0001>
module attributes {stable_mosaic.version = 11 : i64} {
  func.func @se_kernel(%arg0: i32, %arg1: memref<2x8x128xf32, #tpu.memory_space<vmem>>, %arg2: memref<8x4xf32, #tpu.memory_space<vmem>>, %arg3: memref<1x4xf32, #tpu.memory_space<vmem>>, %arg4: memref<4x8xf32, #tpu.memory_space<vmem>>, %arg5: memref<1x8xf32, #tpu.memory_space<vmem>>, %arg6: memref<2x8x128xf32, #tpu.memory_space<vmem>>) attributes {dimension_semantics = [#tpu.dimension_semantics<parallel>], iteration_bounds = array<i64: 1>, scalar_prefetch = 0 : i64, scratch_operands = 0 : i64, tpu.core_type = #tpu.core_type<tc>, window_params = [{transform_indices = @transform_0, window_bounds = array<i64: 2, 8, 128>}, {pipeline_mode = #tpu.pipeline_mode<synchronous>, transform_indices = @transform_1, window_bounds = array<i64: 8, 4>}, {pipeline_mode = #tpu.pipeline_mode<synchronous>, transform_indices = @transform_2, window_bounds = array<i64: 1, 4>}, {pipeline_mode = #tpu.pipeline_mode<synchronous>, transform_indices = @transform_3, window_bounds = array<i64: 4, 8>}, {pipeline_mode = #tpu.pipeline_mode<synchronous>, transform_indices = @transform_4, window_bounds = array<i64: 1, 8>}, {transform_indices = @transform_5, window_bounds = array<i64: 2, 8, 128>}]} {
    %c0 = arith.constant 0 : index
    %c0_0 = arith.constant 0 : index
    %c0_1 = arith.constant 0 : index
    %0 = vector.load %arg1[%c0, %c0_0, %c0_1] : memref<2x8x128xf32, #tpu.memory_space<vmem>>, vector<2x8x128xf32>
    %cst = arith.constant dense<0.000000e+00> : vector<2x8xf32>
    %1 = vector.multi_reduction <add>, %0, %cst [2] : vector<2x8x128xf32> to vector<2x8xf32>
    %cst_2 = arith.constant 1.280000e+02 : f32
    %2 = vector.broadcast %cst_2 : f32 to vector<2x8xf32>
    %3 = arith.divf %1, %2 : vector<2x8xf32>
    %c0_3 = arith.constant 0 : index
    %c0_4 = arith.constant 0 : index
    %4 = vector.load %arg2[%c0_3, %c0_4] : memref<8x4xf32, #tpu.memory_space<vmem>>, vector<8x4xf32>
    %cst_5 = arith.constant dense<0.000000e+00> : vector<2x4xf32>
    %5 = tpu.matmul %3, %4, %cst_5 {dimension_numbers = #tpu.dot_dimension_numbers<[1], [0], [0], [1], [0, 0, 1, 1], [], []>} : vector<2x8xf32>, vector<8x4xf32>, vector<2x4xf32> -> vector<2x4xf32>
    %c0_6 = arith.constant 0 : index
    %c0_7 = arith.constant 0 : index
    %6 = vector.load %arg3[%c0_6, %c0_7] : memref<1x4xf32, #tpu.memory_space<vmem>>, vector<1x4xf32>
    %7 = vector.broadcast %6 : vector<1x4xf32> to vector<2x4xf32>
    %8 = arith.addf %5, %7 : vector<2x4xf32>
    %cst_8 = arith.constant 0.000000e+00 : f32
    %9 = vector.broadcast %cst_8 : f32 to vector<2x4xf32>
    %10 = arith.maximumf %8, %9 : vector<2x4xf32>
    %c0_9 = arith.constant 0 : index
    %c0_10 = arith.constant 0 : index
    %11 = vector.load %arg4[%c0_9, %c0_10] : memref<4x8xf32, #tpu.memory_space<vmem>>, vector<4x8xf32>
    %cst_11 = arith.constant dense<0.000000e+00> : vector<2x8xf32>
    %12 = tpu.matmul %10, %11, %cst_11 {dimension_numbers = #tpu.dot_dimension_numbers<[1], [0], [0], [1], [0, 0, 1, 1], [], []>} : vector<2x4xf32>, vector<4x8xf32>, vector<2x8xf32> -> vector<2x8xf32>
    %c0_12 = arith.constant 0 : index
    %c0_13 = arith.constant 0 : index
    %13 = vector.load %arg5[%c0_12, %c0_13] : memref<1x8xf32, #tpu.memory_space<vmem>>, vector<1x8xf32>
    %14 = vector.broadcast %13 : vector<1x8xf32> to vector<2x8xf32>
    %15 = arith.addf %12, %14 : vector<2x8xf32>
    %16 = arith.negf %15 : vector<2x8xf32>
    %17 = math.exp %16 : vector<2x8xf32>
    %cst_14 = arith.constant 1.000000e+00 : f32
    %18 = vector.broadcast %cst_14 : f32 to vector<2x8xf32>
    %19 = arith.addf %18, %17 : vector<2x8xf32>
    %20 = arith.divf %18, %19 : vector<2x8xf32>
    %21 = vector.shape_cast %20 : vector<2x8xf32> to vector<2x8x1xf32>
    %22 = vector.broadcast %21 : vector<2x8x1xf32> to vector<2x8x128xf32>
    %23 = arith.mulf %0, %22 : vector<2x8x128xf32>
    %c0_15 = arith.constant 0 : index
    %c0_16 = arith.constant 0 : index
    %c0_17 = arith.constant 0 : index
    %24 = vector.load %arg6[%c0_15, %c0_16, %c0_17] : memref<2x8x128xf32, #tpu.memory_space<vmem>>, vector<2x8x128xf32>
    tpu.vector_store %arg6[%c0_15, %c0_16, %c0_17], %23 {strides = array<i32>} : memref<2x8x128xf32, #tpu.memory_space<vmem>>, vector<2x8x128xf32>,
    return
  }
  func.func @transform_0(%arg0: i32) -> (i32, i32, i32) {
    %c0_i32 = arith.constant 0 : i32
    %c0_i32_0 = arith.constant 0 : i32
    %c0_i32_1 = arith.constant 0 : i32
    return %arg0, %c0_i32, %c0_i32_0 : i32, i32, i32
  }
  func.func @transform_1(%arg0: i32) -> (i32, i32) {
    %c0_i32 = arith.constant 0 : i32
    %c0_i32_0 = arith.constant 0 : i32
    %c0_i32_1 = arith.constant 0 : i32
    return %c0_i32, %c0_i32_0 : i32, i32
  }
  func.func @transform_2(%arg0: i32) -> (i32, i32) {
    %c0_i32 = arith.constant 0 : i32
    %c0_i32_0 = arith.constant 0 : i32
    %c0_i32_1 = arith.constant 0 : i32
    return %c0_i32, %c0_i32_0 : i32, i32
  }
  func.func @transform_3(%arg0: i32) -> (i32, i32) {
    %c0_i32 = arith.constant 0 : i32
    %c0_i32_0 = arith.constant 0 : i32
    %c0_i32_1 = arith.constant 0 : i32
    return %c0_i32, %c0_i32_0 : i32, i32
  }
  func.func @transform_4(%arg0: i32) -> (i32, i32) {
    %c0_i32 = arith.constant 0 : i32
    %c0_i32_0 = arith.constant 0 : i32
    %c0_i32_1 = arith.constant 0 : i32
    return %c0_i32, %c0_i32_0 : i32, i32
  }
  func.func @transform_5(%arg0: i32) -> (i32, i32, i32) {
    %c0_i32 = arith.constant 0 : i32
    %c0_i32_0 = arith.constant 0 : i32
    %c0_i32_1 = arith.constant 0 : i32
    return %arg0, %c0_i32, %c0_i32_0 : i32, i32, i32
  }
}

</mosaic_0001>

<bundles_post_ra>
// kernel: squeeze_excite.1
= control target key start
LH: loop header
LB: loop body
LE: loop exit
PB: predicated region body
PF: predicated region fallthrough
CT: control target
= control target key end

     0   :  { %s370_s0 = inlined_call_operand.vmem [shape: f32[2,8,128], index: 0, kind: input, shape index: {}]   ;;  %s371_s1 = inlined_call_operand.vmem [shape: f32[8,4], index: 1, kind: input, shape index: {}]   ;;  %s372_s2 = inlined_call_operand.vmem [shape: f32[1,4], index: 2, kind: input, shape index: {}]   ;;  %s373_s3 = inlined_call_operand.vmem [shape: f32[4,8], index: 3, kind: input, shape index: {}]   ;;  %s374_s4 = inlined_call_operand.vmem [shape: f32[1,8], index: 4, kind: input, shape index: {}]   ;;  %s375_s5 = inlined_call_operand.hbm [shape: f32[2,8,128], index: 5, kind: output, shape index: {}]  }
   0x1   :  { %v21_v0 = vld [vmem:[%s370_s0] sm:$0xff] }
   0x2   :  { %10 = vsyncpa [#allocation3], 0  ;;  %23 = vadd.xlane.f32.xlu0 %v21_v0  ;;  %v22_v1 = vld [vmem:[%s370_s0 + $0x8] sm:$0xff]  ;;  %v30_v2 = vld [vmem:[%s371_s1] sm:$0xff]  ;;  %v305_v3 = vmov 0.0   ;;  %vm306_vm0 = vmmov 0   ;;  %v40_v4 = vlaneseq }
   0x3   :  { %262 = vmatprep.subr.mxu0 %v305_v3  ;;  %264 = vmatprep.mubr.msk.f32.mxu0 %vm306_vm0, %v305_v3  ;;  %vm50_vm1 = vcmask 1041409   ;;  %vm52_vm2 = vcmask 64512   ;;  %v126_v15 = vld [vmem:[%s373_s3] sm:$0xf]  ;;  %vm138_vm3 = vcmask 1043456   ;;  %vm134_vm4 = vcmask 31744  }
   0x4   :  { %263 = vmatpush3.msra.mxu0 %v30_v2  ;;  %267 = vmatprep.subr.mxu1 %v305_v3  ;;  %v41_v5 = vand.u32 127, %v40_v4  ;;  %v43_v6 = vshrl.u32 %v40_v4, 7  ;;  %v252_v16 = vld [vmem:[%s372_s2] ss:$0 sm:$0xff]  ;;  %s307_s2 = smov [#allocation2]  }
   0x5   :  { %269 = vmatprep.mubr.msk.f32.mxu1 %vm306_vm0, %v305_v3  ;;  %268 = vmatpush3.msk.msra.mxu1 %vm138_vm3, %v126_v15  ;;  %v254_v21 = vld [vmem:[%s374_s4] ss:$0 sm:$0xff]  ;;  %s241_s3 = sshll.u32 %s307_s2, 4  ;;  %s242_s3 = int_to_ptr.vmem [resolvable:$true] %s241_s3 }
   0x6   :  { %25 = vadd.xlane.f32.xlu0 %v22_v1  ;;  %v44_v8 = vsub.s32 %v41_v5, %v43_v6  ;;  %v220_v28 = vsub.s32 0, %v43_v6  ;;  %v227_v31 = vsub.s32 1, %v43_v6  ;;  %s281_s4 = scalar_lea.vmem %s242_s3, 256  ;;  %p286_p1 = scmp.lt.s32.totalorder %s242_s3, %s242_s3 }
   0x7   :  { %p282_p0 = scmp.ne.s32.totalorder %s242_s3, %s281_s4  ;;  %p287_p2 = scmp.lt.s32.totalorder %s281_s4, %s281_s4 }
   0x9   :  { %p288_p3 = por %p287_p2, %p286_p1 }
   0xb   :  { %p289_p4 = pnand %p288_p3, %p282_p0 }
  0x8f   :  { %v24_v7 = vpop.xlane.xlu0 %23 }
  0x90   :  { %v28_v9 = vmul.f32 0.0078125, %v24_v7 }
  0x92   :  { %v45_v12 = vrot.slane %v28_v9, %v44_v8 }
  0x93   :  { %v26_v10 = vpop.xlane.xlu0 %25 }
  0x94   :  { %v29_v11 = vmul.f32 0.0078125, %v26_v10 }
  0x96   :  { %v49_v13 = vrot.slane %v29_v11, %v44_v8 }
  0x98   :  { %v51_v14 = vsel %vm50_vm1, %v49_v13, %v45_v12 }
  0x99   :  { %265 = vmatmul.mubr.msk.f32.vlgmr.msra.gmra.mrb[0].mxu0 %vm52_vm2, %v51_v14 }
 0x16c   :  { %v121_v17 = vpop.f32.mrb[0].mxu0 }
 0x16d   :  { %v122_v18 = vadd.f32 %v252_v16, %v121_v17  ;;  %v266_v19 = vpop.f32.mrb[1].mxu0 }
 0x16f   :  { %v125_v20 = vmax.f32 %v122_v18, 0.0 }
 0x171   :  { %270 = vmatmul.mubr.msk.f32.vlgmr.msra.gmra.mrb[0].mxu1 %vm134_vm4, %v125_v20 }
 0x244   :  { %v208_v22 = vpop.f32.mrb[0].mxu1 }
 0x245   :  { %v209_v23 = vadd.f32 %v254_v21, %v208_v22  ;;  %v271_v24 = vpop.f32.mrb[1].mxu1 }
 0x247   :  { %v257_v25 = vmul.f32 -1.442695, %v209_v23 }
 0x249   :  { %277 = vpow2.f32 %v257_v25 }
 0x253   :  { %v278_v26 = vpop.eup %277 }
 0x254   :  { %v215_v27 = vadd.f32 1.0, %v278_v26 }
 0x256   :  { %279 = vrcp.f32 %v215_v27 }
 0x260   :  { %v280_v29 = vpop.eup %279 }
 0x261   :  { %v221_v30 = vrot.slane %v280_v29, %v220_v28  ;;  %v228_v32 = vrot.slane %v280_v29, %v227_v31 }
 0x263   :  { %223 = vbcast.lane.b32.xlu1 %v221_v30, 256 }
 0x267   :  { %230 = vbcast.lane.b32.xlu1 %v228_v32, 256 }
 0x2d5   :  { %v224_v33 = vpop.permute.xlu1 %223 }
 0x2d6   :  { %v232_v34 = vmul.f32 %v224_v33, %v21_v0 }
 0x2d8   :  { %234 = vst [vmem:[#allocation2] sm:$0xff] %v232_v34 }
 0x2d9   :  { %v231_v35 = vpop.permute.xlu1 %230 }
 0x2da   :  { %v233_v36 = vmul.f32 %v231_v35, %v22_v1 }
 0x2dc   :  { %235 = vst [vmem:[#allocation2 + $0x8] sm:$0xff] %v233_v36 }
 0x2dd   :  { %292 = shalt.err (!%p289_p4)
}
 0x2de   :  { %s293_s30 = scalar_lea.hbm %s375_s5, 256 }
 0x2df   :  { %p294_p5 = scmp.ne.s32.totalorder %s375_s5, %s293_s30  ;;  %p297_p6 = scmp.lt.u32.totalorder %s293_s30, %s375_s5 }
 0x2e1   :  { %p299_p7 = pnand %p297_p6, %p294_p5 }
 0x2e3   :  { %302 = shalt.err (!%p299_p7)
}
 0x2e4   :  { %s308_s10 = smov 128   ;;  %s309_s11 = smov 8  }
 0x2e5   :  { %247 = dma.vmem_to_hbm [thread:$0]  %s242_s3, 256, %s375_s5, [#allocation3], %s308_s10, %s308_s10, %s309_s11  }
 0x2e6   :  { %303 = dma.done.wait [#allocation3], 256  }
 0x2e7   :  { %304 = vsyncadd [#allocation3], 4294967040 }
 0x2e8   :  { %251 = vsyncpa [#allocation3], 1 }

</bundles_post_ra>
